<compile_context>
chip_gen: v7x
topology: tpu7x:2x2x1
jax: 0.10.0
libtpu: 0.0.40
codegen_flags: <defaults>
</compile_context>

<pallas_src>
import jax
import jax.numpy as jnp
from jax.experimental import pallas as pl
from jax.experimental.pallas import tpu as pltpu

CLS_PAD = 8  # pad the 2-way classifier to 8 rows (one f32 sublane tile)


# ---------------------------------------------------------------------------
# Kernel: QA head projection (Linear(H, 2)), activations streamed as MXU LHS
# ---------------------------------------------------------------------------
def qa_head_kernel(x_ref, wT_ref, b_ref, out_ref):
    # x_ref:   (TM, H)       activation dtype (bf16 preferred)
    # wT_ref:  (CLS_PAD, H)  same dtype as x (classes padded to 8 rows)
    # b_ref:   (1, CLS_PAD)  f32
    # out_ref: (TM, CLS_PAD) f32
    #
    # Contract H with H: x is the streaming LHS, the tiny 8-column weight tile
    # is the resident RHS.  Do NOT emit (8, TM) from the MXU — that would make
    # x the stationary/pushed operand and force a layout transpose of the big
    # (TM, H) block (perf review).
    logits = jax.lax.dot_general(
        x_ref[...], wT_ref[...],
        dimension_numbers=(((1,), (1,)), ((), ())),
        preferred_element_type=jnp.float32)          # (TM, CLS_PAD)
    out_ref[...] = logits + b_ref[...]


def prepare_qa_head_params(w, b, compute_dtype=jnp.bfloat16):
    """Pad/transpose the Linear(H, 2) params once (cache with the params)."""
    H, C = w.shape
    wT_pad = jnp.zeros((CLS_PAD, H), compute_dtype).at[:C, :].set(
        w.T.astype(compute_dtype))
    b_pad = jnp.zeros((1, CLS_PAD), jnp.float32).at[0, :C].set(
        b.astype(jnp.float32))
    return wT_pad, b_pad


def qa_head(sequence_output, wT_pad, b_pad, *, tm=None):
    """Linear(hidden, 2) per token.  Returns (start_logits, end_logits)."""
    B, S, H = sequence_output.shape
    N = B * S
    x = sequence_output.reshape(N, H)        # flatten tokens; no dtype cast
    wT_pad = wT_pad.astype(x.dtype)          # matching MXU operand dtypes

    itemsize = jnp.dtype(x.dtype).itemsize
    if tm is None:
        # One x buffer ~12 MiB -> double-buffered ~24 MiB; tm in [128, 8192].
        per_buf_budget = 12 * 1024 * 1024
        tm = per_buf_budget // (H * itemsize)
        tm = max(128, min(8192, (tm // 128) * 128))
    # Keep >= 2 grid steps whenever N allows it so the "parallel" axis can be
    # split across v7x's 2 TensorCores.
    tm = min(tm, max(128, pl.cdiv(pl.cdiv(N, 128), 2) * 128))

    grid = (pl.cdiv(N, tm),)   # no jnp.pad: Pallas masks the ragged last block

    # Double-buffered x + out + resident weights, plus headroom; cap at 48 MiB
    # so the footprint stays safe on v7x's 64 MiB per-TC VMEM.
    vmem_need = (2 * tm * H * itemsize            # x double buffer
                 + 2 * tm * CLS_PAD * 4           # out double buffer
                 + 2 * CLS_PAD * H * itemsize     # weights
                 + 2 * CLS_PAD * 4)               # bias
    vmem_limit = min(48 * 1024 * 1024,
                     max(32 * 1024 * 1024, vmem_need + 8 * 1024 * 1024))

    out = pl.pallas_call(
        qa_head_kernel,
        out_shape=jax.ShapeDtypeStruct((N, CLS_PAD), jnp.float32),
        grid_spec=pltpu.PrefetchScalarGridSpec(
            num_scalar_prefetch=0,
            grid=grid,
            in_specs=[
                pl.BlockSpec((tm, H), lambda i: (i, 0)),
                pl.BlockSpec((CLS_PAD, H), lambda i: (0, 0)),
                pl.BlockSpec((1, CLS_PAD), lambda i: (0, 0)),
            ],
            out_specs=pl.BlockSpec((tm, CLS_PAD), lambda i: (i, 0)),
        ),
        compiler_params=pltpu.CompilerParams(
            dimension_semantics=("parallel",),
            vmem_limit_bytes=vmem_limit,
        ),
    )(x, wT_pad, b_pad)

    # Columns 0/1 of the padded classifier == logits.split(1, -1) squeezed.
    start_logits = out[:, 0].reshape(B, S)
    end_logits = out[:, 1].reshape(B, S)
    return start_logits, end_logits


# ---------------------------------------------------------------------------
# CrossEntropyLoss(ignore_index=S) for start / end positions.
# Per the perf review this is microscopic (B, S) work, so it is left to plain
# jnp / XLA fusion instead of a dedicated pallas_call (saves a kernel launch
# and an extra HBM round-trip of the logits).
# ---------------------------------------------------------------------------
def qa_loss(start_logits, end_logits, start_positions, end_positions):
    B, S = start_logits.shape

    def ce_mean(logits, pos):
        # mirrors positions.clamp_(0, ignored_index) with ignored_index = S
        pos = jnp.clip(pos.reshape(-1), 0, S).astype(jnp.int32)
        valid = pos != S                               # ignore_index == S
        safe = jnp.where(valid, pos, 0)
        logits = logits.astype(jnp.float32)
        lse = jax.scipy.special.logsumexp(logits, axis=-1)
        picked = jnp.take_along_axis(logits, safe[:, None], axis=-1)[:, 0]
        per = jnp.where(valid, lse - picked, 0.0)
        # NOTE: 0/0 = NaN when every position is ignored — matches
        # torch.nn.CrossEntropyLoss on an all-ignored batch.
        return jnp.sum(per) / jnp.sum(valid.astype(jnp.float32))

    start_loss = ce_mean(start_logits, start_positions)
    end_loss = ce_mean(end_logits, end_positions)
    return (start_loss + end_loss) / 2.0


# ---------------------------------------------------------------------------
# CustomModel.forward equivalent (DPR head path)
# ---------------------------------------------------------------------------
def custom_model_forward(sequence_output, wT_pad, b_pad,
                         start_positions=None, end_positions=None):
    start_logits, end_logits = qa_head(sequence_output, wT_pad, b_pad)
    total_loss = None
    if start_positions is not None and end_positions is not None:
        total_loss = qa_loss(start_logits, end_logits,
                             start_positions, end_positions)
    return total_loss, start_logits, end_logits


if __name__ == "__main__":
    B, S, H = 2, 128, 32
    key = jax.random.PRNGKey(0)
    k_seq, k_w = jax.random.split(key)

    # sequence_output plays the role of backbone(input_ids)[0] (bf16 on TPU).
    sequence_output = jax.random.normal(
        k_seq, (B, S, H), dtype=jnp.float32).astype(jnp.bfloat16)

    # DPR QA head: nn.Linear(input_size, 2), init per _init_weight:
    #   weight ~ N(0, 0.02), bias = 0
    w = (0.02 * jax.random.normal(k_w, (H, 2), dtype=jnp.float32)).astype(jnp.bfloat16)
    b = jnp.zeros((2,), dtype=jnp.float32)

    # Pad/transpose the head params once (hoisted out of the per-call path).
    wT_pad, b_pad = prepare_qa_head_params(w, b, compute_dtype=jnp.bfloat16)

    start_positions = jnp.array([3, 50], dtype=jnp.int32)
    end_positions = jnp.array([10, 60], dtype=jnp.int32)

    total_loss, start_logits, end_logits = custom_model_forward(
        sequence_output, wT_pad, b_pad, start_positions, end_positions)
    jax.block_until_ready((total_loss, start_logits, end_logits))

    # lightweight correctness check against a pure-JAX reference
    ref_logits = jnp.einsum("bsh,hc->bsc", sequence_output, w,
                            preferred_element_type=jnp.float32) + b
    ref_sl, ref_el = ref_logits[..., 0], ref_logits[..., 1]

    def ref_ce(logits, pos):
        lse = jax.scipy.special.logsumexp(logits, axis=-1)
        picked = jnp.take_along_axis(logits, pos[:, None], axis=-1)[:, 0]
        return jnp.mean(lse - picked)

    ref_loss = (ref_ce(ref_sl, start_positions) + ref_ce(ref_el, end_positions)) / 2.0

    assert jnp.allclose(start_logits, ref_sl, atol=1e-3, rtol=1e-3)
    assert jnp.allclose(end_logits, ref_el, atol=1e-3, rtol=1e-3)
    assert jnp.allclose(total_loss, ref_loss, atol=1e-3, rtol=1e-3)

    print("KERNEL_OK")
</pallas_src>

<mosaic_0001>
module attributes {stable_mosaic.version = 11 : i64} {
  func.func @qa_head_kernel(%arg0: i32, %arg1: memref<128x32xbf16, #tpu.memory_space<vmem>>, %arg2: memref<8x32xbf16, #tpu.memory_space<vmem>>, %arg3: memref<1x8xf32, #tpu.memory_space<vmem>>, %arg4: memref<128x8xf32, #tpu.memory_space<vmem>>) attributes {dimension_semantics = [#tpu.dimension_semantics<parallel>], iteration_bounds = array<i64: 2>, scalar_prefetch = 0 : i64, scratch_operands = 0 : i64, tpu.core_type = #tpu.core_type<tc>, window_params = [{transform_indices = @transform_0, window_bounds = array<i64: 128, 32>}, {pipeline_mode = #tpu.pipeline_mode<synchronous>, transform_indices = @transform_1, window_bounds = array<i64: 8, 32>}, {pipeline_mode = #tpu.pipeline_mode<synchronous>, transform_indices = @transform_2, window_bounds = array<i64: 1, 8>}, {transform_indices = @transform_3, window_bounds = array<i64: 128, 8>}]} {
    %c0 = arith.constant 0 : index
    %c0_0 = arith.constant 0 : index
    %0 = vector.load %arg1[%c0, %c0_0] : memref<128x32xbf16, #tpu.memory_space<vmem>>, vector<128x32xbf16>
    %c0_1 = arith.constant 0 : index
    %c0_2 = arith.constant 0 : index
    %1 = vector.load %arg2[%c0_1, %c0_2] : memref<8x32xbf16, #tpu.memory_space<vmem>>, vector<8x32xbf16>
    %cst = arith.constant dense<0.000000e+00> : vector<128x8xf32>
    %2 = tpu.matmul %0, %1, %cst {dimension_numbers = #tpu.dot_dimension_numbers<[1], [1], [0], [0], [0, 0, 1, 0], [], []>} : vector<128x32xbf16>, vector<8x32xbf16>, vector<128x8xf32> -> vector<128x8xf32>
    %c0_3 = arith.constant 0 : index
    %c0_4 = arith.constant 0 : index
    %3 = vector.load %arg3[%c0_3, %c0_4] : memref<1x8xf32, #tpu.memory_space<vmem>>, vector<1x8xf32>
    %4 = vector.broadcast %3 : vector<1x8xf32> to vector<128x8xf32>
    %5 = arith.addf %2, %4 : vector<128x8xf32>
    %c0_5 = arith.constant 0 : index
    %c0_6 = arith.constant 0 : index
    %6 = vector.load %arg4[%c0_5, %c0_6] : memref<128x8xf32, #tpu.memory_space<vmem>>, vector<128x8xf32>
    tpu.vector_store %arg4[%c0_5, %c0_6], %5 {strides = array<i32>} : memref<128x8xf32, #tpu.memory_space<vmem>>, vector<128x8xf32>,
    return
  }
  func.func @transform_0(%arg0: i32) -> (i32, i32) {
    %c0_i32 = arith.constant 0 : i32
    %c0_i32_0 = arith.constant 0 : i32
    return %arg0, %c0_i32 : i32, i32
  }
  func.func @transform_1(%arg0: i32) -> (i32, i32) {
    %c0_i32 = arith.constant 0 : i32
    %c0_i32_0 = arith.constant 0 : i32
    %c0_i32_1 = arith.constant 0 : i32
    return %c0_i32, %c0_i32_0 : i32, i32
  }
  func.func @transform_2(%arg0: i32) -> (i32, i32) {
    %c0_i32 = arith.constant 0 : i32
    %c0_i32_0 = arith.constant 0 : i32
    %c0_i32_1 = arith.constant 0 : i32
    return %c0_i32, %c0_i32_0 : i32, i32
  }
  func.func @transform_3(%arg0: i32) -> (i32, i32) {
    %c0_i32 = arith.constant 0 : i32
    %c0_i32_0 = arith.constant 0 : i32
    return %arg0, %c0_i32 : i32, i32
  }
}

</mosaic_0001>

<bundles_post_ra>
// kernel: tpu_custom_call.1
= control target key start
LH: loop header
LB: loop body
LE: loop exit
PB: predicated region body
PF: predicated region fallthrough
CT: control target
= control target key end

     0   :  { %s540_s12 = smov 0   ;;  %s608_s0 = inlined_call_operand.vmem [shape: bf16[256,32], index: 0, kind: input, shape index: {}]   ;;  %s609_s1 = inlined_call_operand.vmem [shape: bf16[8,32], index: 1, kind: input, shape index: {}]   ;;  %s610_s2 = inlined_call_operand.vmem [shape: f32[1,8], index: 2, kind: input, shape index: {}]   ;;  %s611_s3 = inlined_call_operand.vmem [shape: f32[256,8], index: 3, kind: output, shape index: {}]  }
   0x1 LB: > { %s437_s13 = sadd.s32 4294967295, %s518_s12   ;;  %p441_p0 = scmp.ge.s32.totalorder %s518_s12, 1  ;;  %s518_s12 = sphi %s540_s12, %s13_s12  }
   0x2   : > { %p138_p1 = scmp.lt.s32.totalorder %s518_s12, 3 }
   0x4   : > { %p139_p2 = pnand %p441_p0, %p138_p1 }
   0x5   : > { %v191_v0 = vld [vmem:[%s609_s1] sm:$0xf] (!%p139_p2)  ;;  %vm239_vm0 = vcmask (!%p139_p2), 261120   ;;  %s442_s16 = sshll.u32 (!%p139_p2), %s437_s13, 4  ;;  %vm364_vm1 = vcmask (!%p139_p2), 64512  }
   0x6   : > { %142 = sbr.rel (%p139_p2) target bundleno = 245 (0xf5), region = 32  ;;  %494 = vmatprep.subr.msk.bf16.mxu0 (!%p139_p2), %vm239_vm0, %v191_v0  ;;  %495 = vmatprep.subr.msk.bf16.mxu1 (!%p139_p2), %vm239_vm0, %v191_v0  ;;  %v265_v1 = vsel (!%p139_p2), %vm239_vm0, %v191_v0, 0  ;;  %p163_p3 = scmp.lt.s32.totalorder (!%p139_p2), %s442_s16, 31  ;;  %v446_v10 = vld [vmem:[%s610_s2] ss:$0 sm:$0xff] (!%p139_p2) }
   0x7   : > { %475 = vmatpush3.bf16.xpose.msra.mxu0 (!%p139_p2), %v265_v1  ;;  %493 = vmatpush3.bf16.xpose.msra.mxu1 (!%p139_p2), %v265_v1 }
   0xd   : > { %s613_s16 = smov (!%p163_p3, %s442_s16), 31 }
   0xe   : > { %s443_s17 = sshll.u32 %s613_s16, 2  ;;  %s445_s21 = sshll.u32 %s613_s16, 3 }
   0xf   : > { %s166_s20 = scalar_lea.vmem %s608_s0, %s443_s17  ;;  %s571_s26 = scalar_lea.vmem %s611_s3, %s445_s21 }
  0x10   : > { %v504_v2 = vld [vmem:[%s166_s20] sm:$0xff]   ;;  %v506_v4 = vld [vmem:[%s166_s20 + $0x8] sm:$0xff]   ;;  %v508_v6 = vld [vmem:[%s166_s20 + $0x10] sm:$0xff]  }
  0x11   : > { %v505_v3 = vld [vmem:[%s166_s20 + $0x20] sm:$0xff]   ;;  %476 = vmatprep.mubr.msk.bf16.mxu0 %vm239_vm0, %v504_v2  ;;  %v507_v5 = vld [vmem:[%s166_s20 + $0x28] sm:$0xff]   ;;  %v509_v7 = vld [vmem:[%s166_s20 + $0x30] sm:$0xff]  }
  0x12   : > { %484 = vmatprep.mubr.msk.bf16.mxu1 %vm239_vm0, %v505_v3  ;;  %477 = vmatmul.mubr.msk.bf16.vlgmr.msra.gmra.mrb[0].mxu0 %vm239_vm0, %v506_v4  ;;  %v510_v8 = vld [vmem:[%s166_s20 + $0x18] sm:$0xff]  }
  0x13   : > { %485 = vmatmul.mubr.msk.bf16.vlgmr.msra.gmra.mrb[0].mxu1 %vm239_vm0, %v507_v5  ;;  %480 = vmatprep.mubr.msk.bf16.mxu0 %vm239_vm0, %v508_v6  ;;  %v511_v9 = vld [vmem:[%s166_s20 + $0x38] sm:$0xff]  }
  0x14   : > { %488 = vmatprep.mubr.msk.bf16.mxu1 %vm239_vm0, %v509_v7 }
  0x1a   : > { %481 = vmatmul.mubr.msk.bf16.gmra.mrb[4].mxu0 %vm239_vm0, %v510_v8 }
  0x1b   : > { %489 = vmatmul.mubr.msk.bf16.gmra.mrb[4].mxu1 %vm239_vm0, %v511_v9 }
  0xe5   : > { %v478_v11 = vpop.f32.mrb[0].mxu0 }
  0xe6   : > { %v310_v12 = vadd.f32 %v478_v11, %v446_v10  ;;  %v486_v13 = vpop.f32.mrb[0].mxu1  ;;  %v301_v14 = vpop.f32.mrb[1].mxu0 }
  0xe7   : > { %v342_v15 = vadd.f32 %v486_v13, %v446_v10  ;;  %v302_v16 = vadd.f32 %v446_v10, %v301_v14  ;;  %v333_v17 = vpop.f32.mrb[1].mxu1  ;;  %v479_v18 = vpop.f32.mrb[2].mxu0 }
  0xe8   : > { %367 = vst.msk [vmem:[%s571_s26 + $0x10] sm:$0xff] %vm364_vm1, %v310_v12  ;;  %v334_v19 = vadd.f32 %v446_v10, %v333_v17  ;;  %v313_v20 = vadd.f32 %v479_v18, %v446_v10  ;;  %v487_v21 = vpop.f32.mrb[2].mxu1  ;;  %v304_v22 = vpop.f32.mrb[3].mxu0 }
  0xe9   : > { %375 = vst.msk [vmem:[%s571_s26 + $0x50] sm:$0xff] %vm364_vm1, %v342_v15  ;;  %365 = vst.msk [vmem:[%s571_s26] sm:$0xff] %vm364_vm1, %v302_v16  ;;  %v345_v23 = vadd.f32 %v487_v21, %v446_v10  ;;  %v305_v24 = vadd.f32 %v446_v10, %v304_v22  ;;  %v336_v25 = vpop.f32.mrb[3].mxu1 }
  0xea   : > { %373 = vst.msk [vmem:[%s571_s26 + $0x40] sm:$0xff] %vm364_vm1, %v334_v19  ;;  %368 = vst.msk [vmem:[%s571_s26 + $0x18] sm:$0xff] %vm364_vm1, %v313_v20  ;;  %v337_v26 = vadd.f32 %v446_v10, %v336_v25 }
  0xeb   : > { %376 = vst.msk [vmem:[%s571_s26 + $0x58] sm:$0xff] %vm364_vm1, %v345_v23  ;;  %366 = vst.msk [vmem:[%s571_s26 + $0x8] sm:$0xff] %vm364_vm1, %v305_v24 }
  0xec   : > { %374 = vst.msk [vmem:[%s571_s26 + $0x48] sm:$0xff] %vm364_vm1, %v337_v26 }
  0xed   : > { %v482_v27 = vpop.f32.mrb[4].mxu0 }
  0xee   : > { %v326_v28 = vadd.f32 %v482_v27, %v446_v10  ;;  %v490_v29 = vpop.f32.mrb[4].mxu1  ;;  %v317_v30 = vpop.f32.mrb[5].mxu0 }
  0xef   : > { %v358_v31 = vadd.f32 %v490_v29, %v446_v10  ;;  %v318_v32 = vadd.f32 %v446_v10, %v317_v30  ;;  %v349_v33 = vpop.f32.mrb[5].mxu1  ;;  %v483_v34 = vpop.f32.mrb[6].mxu0 }
  0xf0   : > { %371 = vst.msk [vmem:[%s571_s26 + $0x30] sm:$0xff] %vm364_vm1, %v326_v28  ;;  %v350_v35 = vadd.f32 %v446_v10, %v349_v33  ;;  %v329_v36 = vadd.f32 %v483_v34, %v446_v10  ;;  %v491_v37 = vpop.f32.mrb[6].mxu1  ;;  %v320_v38 = vpop.f32.mrb[7].mxu0 }
  0xf1   : > { %379 = vst.msk [vmem:[%s571_s26 + $0x70] sm:$0xff] %vm364_vm1, %v358_v31  ;;  %369 = vst.msk [vmem:[%s571_s26 + $0x20] sm:$0xff] %vm364_vm1, %v318_v32  ;;  %v361_v39 = vadd.f32 %v491_v37, %v446_v10  ;;  %v321_v40 = vadd.f32 %v446_v10, %v320_v38  ;;  %v352_v41 = vpop.f32.mrb[7].mxu1 }
  0xf2   : > { %377 = vst.msk [vmem:[%s571_s26 + $0x60] sm:$0xff] %vm364_vm1, %v350_v35  ;;  %372 = vst.msk [vmem:[%s571_s26 + $0x38] sm:$0xff] %vm364_vm1, %v329_v36  ;;  %v353_v42 = vadd.f32 %v446_v10, %v352_v41 }
  0xf3   : > { %380 = vst.msk [vmem:[%s571_s26 + $0x78] sm:$0xff] %vm364_vm1, %v361_v39  ;;  %370 = vst.msk [vmem:[%s571_s26 + $0x28] sm:$0xff] %vm364_vm1, %v321_v40 }
  0xf4   : > { %378 = vst.msk [vmem:[%s571_s26 + $0x68] sm:$0xff] %vm364_vm1, %v353_v42 }
  0xf5 PF: > { %s13_s12 = sadd.s32 1, %s518_s12  }
  0xf6   : > { %p10_p4 = scmp.ge.s32.totalorder %s13_s12, 4  }
  0xf8   :  { %12 = sbr.rel (!%p10_p4) target bundleno = 1 (0x1), region = 62 }

</bundles_post_ra>
